<compile_context>
chip_gen: v6e
topology: v6e:2x2x1
jax: 0.10.0
libtpu: 0.0.40
codegen_flags: <defaults>
</compile_context>

<pallas_src>
import jax
import jax.numpy as jnp
from jax.experimental import pallas as pl
from jax.experimental.pallas import tpu as pltpu


def _conv1x1_relu_border_kernel(w_ref, b_ref, brd_ref, m_ref, x_ref, o_ref):
    # w_ref:   VMEM (Cout, Cin) f32   -- 1x1 conv weights
    # b_ref:   VMEM (Cout, 1)   f32   -- bias
    # brd_ref: VMEM (Cout, 1)   f32   -- border constant (may be 0 / +inf / NaN)
    # m_ref:   VMEM (1, T)      f32   -- 1.0 on border pixels of the padded image
    # x_ref:   VMEM (Cin, T)    f32   -- zero-padded image, pixels on the lane axis
    # o_ref:   VMEM (Cout, T)   f32
    y = jnp.dot(
        w_ref[...], x_ref[...],
        precision=jax.lax.Precision.HIGHEST,
        preferred_element_type=jnp.float32,
    )                                               # (Cout, T) on the MXU
    y = jnp.maximum(y + b_ref[...], 0.0)            # bias + relu (lane-broadcast add)
    is_border = jnp.broadcast_to(m_ref[...] != 0.0, y.shape)
    border = jnp.broadcast_to(brd_ref[...], y.shape)
    o_ref[...] = jnp.where(is_border, border, y).astype(o_ref.dtype)


def _pick_tile(p, cap=32 * 1024):
    """Pixel tile: multiple of 128 (unless p <= 128), <= p, capped for VMEM."""
    if p <= 128:
        return p
    return min(cap, (p // 128) * 128)


def model_forward(x_nchw, weight, bias):
    """x_nchw: (N, Cin, H, W) f32; weight: (Cout, Cin, 1, 1) f32; bias: (Cout,) f32."""
    N, C, H, W = x_nchw.shape
    Cout = weight.shape[0]
    Hp, Wp = H + 2, W + 2
    P = Hp * Wp

    x_nchw = x_nchw.astype(jnp.float32)
    w_mat = weight.reshape(Cout, C).astype(jnp.float32)          # (Cout, Cin)
    b_col = bias.reshape(Cout, 1).astype(jnp.float32)            # (Cout, 1)

    # Border constant: relu(conv of an all(-inf) pixel).  0 / +inf / NaN per channel.
    border = jax.nn.relu(jnp.sum(w_mat * (-jnp.inf), axis=1, keepdims=True) + b_col)

    # Zero-pad the spatial border (those pixels are overwritten by `border` in-kernel),
    # then flatten pixels onto the lane axis.  This touches only the 3-channel input.
    x_pad = jnp.pad(x_nchw, ((0, 0), (0, 0), (1, 1), (1, 1)))
    x_flat = x_pad.reshape(N, C, P)

    # Border-pixel mask along the flattened padded-pixel axis (tiny constant).
    rows = jax.lax.broadcasted_iota(jnp.int32, (Hp, Wp), 0)
    cols = jax.lax.broadcasted_iota(jnp.int32, (Hp, Wp), 1)
    mask2d = (rows == 0) | (rows == Hp - 1) | (cols == 0) | (cols == Wp - 1)
    mask = mask2d.reshape(1, P).astype(jnp.float32)

    T = _pick_tile(P)
    # Keep >= 2 grid steps so both v7x TensorCores get work even when N == 1.
    if N == 1 and pl.cdiv(P, T) < 2 and T > 128:
        T = max(128, ((T // 2) // 128) * 128)
    grid = (N, pl.cdiv(P, T))

    out_flat = pl.pallas_call(
        _conv1x1_relu_border_kernel,
        out_shape=jax.ShapeDtypeStruct((N, Cout, P), jnp.float32),
        grid=grid,
        in_specs=[
            pl.BlockSpec((Cout, C), lambda n, t: (0, 0)),        # weights (tiny, resident)
            pl.BlockSpec((Cout, 1), lambda n, t: (0, 0)),        # bias
            pl.BlockSpec((Cout, 1), lambda n, t: (0, 0)),        # border constant
            pl.BlockSpec((1, T), lambda n, t: (0, t)),           # border mask (pixel-tiled)
            pl.BlockSpec((None, C, T), lambda n, t: (n, 0, t)),  # x, pixels lane-dense
        ],
        out_specs=pl.BlockSpec((None, Cout, T), lambda n, t: (n, 0, t)),
        compiler_params=pltpu.CompilerParams(
            dimension_semantics=("parallel", "parallel"),
        ),
        cost_estimate=pl.CostEstimate(
            flops=2 * C * Cout * N * P,
            transcendentals=0,
            bytes_accessed=4 * (C + Cout + 1) * N * P,
        ),
    )(w_mat, b_col, border, mask, x_flat)

    return out_flat.reshape(N, Cout, Hp, Wp)        # free metadata reshape


if __name__ == "__main__":
    key = jax.random.PRNGKey(0)
    kx, kw, kb = jax.random.split(key, 3)

    # Small shapes consistent with the module: Cin must be 3, Cout = 8.
    N, Cin, H, W = 2, 3, 16, 16
    Cout = 8

    x = jax.random.normal(kx, (N, Cin, H, W), dtype=jnp.float32)

    # PyTorch Conv2d default init: U(-1/sqrt(fan_in), 1/sqrt(fan_in))
    fan_in = Cin * 1 * 1
    bound = 1.0 / (fan_in ** 0.5)
    weight = jax.random.uniform(
        kw, (Cout, Cin, 1, 1), minval=-bound, maxval=bound, dtype=jnp.float32
    )
    bias = jax.random.uniform(
        kb, (Cout,), minval=-bound, maxval=bound, dtype=jnp.float32
    )

    forward = jax.jit(model_forward)
    out = jax.block_until_ready(forward(x, weight, bias))
    assert out.shape == (N, Cout, H + 2, W + 2), out.shape

    # Interior reference: elementwise (full f32 precision) 1x1 conv + relu.
    w_mat = weight.reshape(Cout, Cin)
    ref_interior = jax.nn.relu(
        jnp.sum(x[:, None] * w_mat[None, :, :, None, None], axis=2)
        + bias[None, :, None, None]
    )
    assert jnp.allclose(out[:, :, 1:-1, 1:-1], ref_interior, atol=1e-4, rtol=1e-4)

    # Border reference: per-channel constant (NaN-aware equality).
    border_ref = jax.nn.relu(jnp.sum(w_mat * (-jnp.inf), axis=1) + bias)  # (Cout,)
    top = out[:, :, 0, :]
    bref = border_ref[None, :, None]
    same = (top == bref) | (jnp.isnan(top) & jnp.isnan(bref))
    assert bool(jnp.all(same))

    print("KERNEL_OK")
</pallas_src>

<mosaic_0001>
module attributes {stable_mosaic.version = 11 : i64} {
  func.func @_conv1x1_relu_border_kernel(%arg0: i32, %arg1: i32, %arg2: memref<8x3xf32, #tpu.memory_space<vmem>>, %arg3: memref<8x1xf32, #tpu.memory_space<vmem>>, %arg4: memref<8x1xf32, #tpu.memory_space<vmem>>, %arg5: memref<1x256xf32, #tpu.memory_space<vmem>>, %arg6: memref<1x3x256xf32, #tpu.memory_space<vmem>>, %arg7: memref<1x8x256xf32, #tpu.memory_space<vmem>>) attributes {dimension_semantics = [#tpu.dimension_semantics<parallel>, #tpu.dimension_semantics<parallel>], iteration_bounds = array<i64: 2, 2>, scalar_prefetch = 0 : i64, scratch_operands = 0 : i64, tpu.core_type = #tpu.core_type<tc>, window_params = [{pipeline_mode = #tpu.pipeline_mode<synchronous>, transform_indices = @transform_0, window_bounds = array<i64: 8, 3>}, {pipeline_mode = #tpu.pipeline_mode<synchronous>, transform_indices = @transform_1, window_bounds = array<i64: 8, 1>}, {pipeline_mode = #tpu.pipeline_mode<synchronous>, transform_indices = @transform_2, window_bounds = array<i64: 8, 1>}, {transform_indices = @transform_3, window_bounds = array<i64: 1, 256>}, {transform_indices = @transform_4, window_bounds = array<i64: 1, 3, 256>}, {transform_indices = @transform_5, window_bounds = array<i64: 1, 8, 256>}]} {
    %c0 = arith.constant 0 : index
    %c0_0 = arith.constant 0 : index
    %0 = vector.load %arg2[%c0, %c0_0] : memref<8x3xf32, #tpu.memory_space<vmem>>, vector<8x3xf32>
    %c0_1 = arith.constant 0 : index
    %c0_2 = arith.constant 0 : index
    %c0_3 = arith.constant 0 : index
    %1 = vector.load %arg6[%c0_1, %c0_2, %c0_3] : memref<1x3x256xf32, #tpu.memory_space<vmem>>, vector<1x3x256xf32>
    %2 = vector.shape_cast %1 : vector<1x3x256xf32> to vector<3x256xf32>
    %cst = arith.constant dense<0.000000e+00> : vector<8x256xf32>
    %3 = tpu.matmul %0, %2, %cst {dimension_numbers = #tpu.dot_dimension_numbers<[1], [0], [0], [1], [0, 0, 1, 1], [], []>, precision = #tpu.contract_precision<fp32>} : vector<8x3xf32>, vector<3x256xf32>, vector<8x256xf32> -> vector<8x256xf32>
    %c0_4 = arith.constant 0 : index
    %c0_5 = arith.constant 0 : index
    %4 = vector.load %arg3[%c0_4, %c0_5] : memref<8x1xf32, #tpu.memory_space<vmem>>, vector<8x1xf32>
    %5 = vector.broadcast %4 : vector<8x1xf32> to vector<8x256xf32>
    %6 = arith.addf %3, %5 : vector<8x256xf32>
    %cst_6 = arith.constant 0.000000e+00 : f32
    %7 = vector.broadcast %cst_6 : f32 to vector<8x256xf32>
    %8 = arith.maximumf %6, %7 : vector<8x256xf32>
    %c0_7 = arith.constant 0 : index
    %c0_8 = arith.constant 0 : index
    %9 = vector.load %arg5[%c0_7, %c0_8] : memref<1x256xf32, #tpu.memory_space<vmem>>, vector<1x256xf32>
    %cst_9 = arith.constant 0.000000e+00 : f32
    %10 = vector.broadcast %cst_9 : f32 to vector<1x256xf32>
    %11 = arith.cmpf one, %9, %10 : vector<1x256xf32>
    %12 = vector.shape_cast %11 : vector<1x256xi1> to vector<1x256xi1>
    %13 = vector.broadcast %12 : vector<1x256xi1> to vector<8x256xi1>
    %c0_10 = arith.constant 0 : index
    %c0_11 = arith.constant 0 : index
    %14 = vector.load %arg4[%c0_10, %c0_11] : memref<8x1xf32, #tpu.memory_space<vmem>>, vector<8x1xf32>
    %15 = vector.shape_cast %14 : vector<8x1xf32> to vector<8x1xf32>
    %16 = vector.broadcast %15 : vector<8x1xf32> to vector<8x256xf32>
    %17 = arith.select %13, %16, %8 : vector<8x256xi1>, vector<8x256xf32>
    %c0_12 = arith.constant 0 : index
    %c0_13 = arith.constant 0 : index
    %c0_14 = arith.constant 0 : index
    %18 = vector.load %arg7[%c0_12, %c0_13, %c0_14] : memref<1x8x256xf32, #tpu.memory_space<vmem>>, vector<1x8x256xf32>
    %19 = vector.shape_cast %18 : vector<1x8x256xf32> to vector<8x256xf32>
    %20 = vector.shape_cast %17 : vector<8x256xf32> to vector<1x8x256xf32>
    tpu.vector_store %arg7[%c0_12, %c0_13, %c0_14], %20 {strides = array<i32>} : memref<1x8x256xf32, #tpu.memory_space<vmem>>, vector<1x8x256xf32>,
    return
  }
  func.func @transform_0(%arg0: i32, %arg1: i32) -> (i32, i32) {
    %c0_i32 = arith.constant 0 : i32
    %c0_i32_0 = arith.constant 0 : i32
    %c0_i32_1 = arith.constant 0 : i32
    return %c0_i32, %c0_i32_0 : i32, i32
  }
  func.func @transform_1(%arg0: i32, %arg1: i32) -> (i32, i32) {
    %c0_i32 = arith.constant 0 : i32
    %c0_i32_0 = arith.constant 0 : i32
    %c0_i32_1 = arith.constant 0 : i32
    return %c0_i32, %c0_i32_0 : i32, i32
  }
  func.func @transform_2(%arg0: i32, %arg1: i32) -> (i32, i32) {
    %c0_i32 = arith.constant 0 : i32
    %c0_i32_0 = arith.constant 0 : i32
    %c0_i32_1 = arith.constant 0 : i32
    return %c0_i32, %c0_i32_0 : i32, i32
  }
  func.func @transform_3(%arg0: i32, %arg1: i32) -> (i32, i32) {
    %c0_i32 = arith.constant 0 : i32
    %c0_i32_0 = arith.constant 0 : i32
    return %c0_i32, %arg1 : i32, i32
  }
  func.func @transform_4(%arg0: i32, %arg1: i32) -> (i32, i32, i32) {
    %c0_i32 = arith.constant 0 : i32
    %c0_i32_0 = arith.constant 0 : i32
    return %arg0, %c0_i32, %arg1 : i32, i32, i32
  }
  func.func @transform_5(%arg0: i32, %arg1: i32) -> (i32, i32, i32) {
    %c0_i32 = arith.constant 0 : i32
    %c0_i32_0 = arith.constant 0 : i32
    return %arg0, %c0_i32, %arg1 : i32, i32, i32
  }
}

</mosaic_0001>

<bundles_post_ra>
// kernel: model_forward.1
= control target key start
LH: loop header
LB: loop body
LE: loop exit
PB: predicated region body
PF: predicated region fallthrough
CT: control target
= control target key end

     0   :  { %s2379_s0 = inlined_call_operand.vmem [shape: f32[8,3], index: 0, kind: input, shape index: {}]   ;;  %s2380_s1 = inlined_call_operand.vmem [shape: f32[8,1], index: 1, kind: input, shape index: {}]   ;;  %s2381_s2 = inlined_call_operand.vmem [shape: f32[8,1], index: 2, kind: input, shape index: {}]   ;;  %s2382_s3 = inlined_call_operand.vmem [shape: f32[1,324], index: 3, kind: input, shape index: {}]   ;;  %s2383_s4 = inlined_call_operand.vmem [shape: f32[2,3,324], index: 4, kind: input, shape index: {}]   ;;  %s2384_s5 = inlined_call_operand.vmem [shape: f32[2,8,324], index: 5, kind: output, shape index: {}]  }
   0x1   :  { %2385 = sst [smem:[#allocation3_spill]] %s2379_s0 }
   0x2   :  { %s1858_s18 = smov 0   ;;  %s1860_s19 = smov 0  }
   0x3   :  { %s1862_s20 = smov 0   ;;  %s1864_s21 = smov 0  }
   0x4   :  { %s1866_s22 = smov 0   ;;  %s1868_s23 = smov 0  }
   0x5   :  { %s1870_s24 = smov 0  }
   0x6 LB: > { %s24_s25 = sadd.s32 1, %s1750_s22  ;;  %s27_s26 = sadd.s32 1, %s1754_s23  ;;  %s1758_s24 = sphi %s1870_s24, %s15_s24   ;;  %s1754_s23 = sphi %s1868_s23, %s2405_s23   ;;  %s1750_s22 = sphi %s1866_s22, %s2404_s22   ;;  %s1746_s21 = sphi %s1864_s21, %s2403_s21   ;;  %s1742_s20 = sphi %s1862_s20, %s2402_s20   ;;  %s1738_s19 = sphi %s1860_s19, %s2401_s19   ;;  %s1734_s18 = sphi %s1858_s18, %s2400_s18  }
   0x7   : > { %p25_p0 = scmp.ge.s32.totalorder %s24_s25, 2  ;;  %s1404_s27 = sadd.s32 4294967295, %s1758_s24  }
   0x8   : > { %p163_p1 = scmp.ne.s32.totalorder %s1738_s19, %s1734_s18  ;;  %p164_p2 = scmp.eq.s32.totalorder %s1404_s27, 3 }
   0x9   : > { %s2407_s25 = smov (%p25_p0, %s24_s25), 0  ;;  %s2409_s26 = smov (!%p25_p0, %s27_s26), %s1754_s23 }
   0xa   : > { %s149_s28 = ssub.s32 %s1750_s22, %s2407_s25  ;;  %p29_p3 = scmp.ge.s32.totalorder %s2409_s26, 2 }
   0xb   : > { %p1408_p4 = scmp.ge.s32.totalorder %s1758_s24, 1  ;;  %p1902_p5 = por %p164_p2, %p163_p1 }
   0xc   : > { %p234_p6 = scmp.lt.s32.totalorder %s1758_s24, 5  ;;  %s2411_s26 = smov (%p29_p3, %s2409_s26), 0 }
   0xd   : > { %s148_s30 = ssub.s32 %s1754_s23, %s2411_s26  ;;  %s153_s7 = sadd.s32 1, %s1738_s19 }
   0xe   : > { %p235_p7 = pnand %p1408_p4, %p234_p6  ;;  %s150_s6 = sor.u32 %s149_s28, %s148_s30 }
   0xf   : > { %p151_p8 = scmp.eq.s32.totalorder %s150_s6, 0  ;;  %s1915_s9 = sshll.u32 (!%p235_p7), %s1742_s20, 1 }
  0x10   : > { %238 = sbr.rel (%p235_p7) target bundleno = 399 (0x18f), region = 40  ;;  %p295_p9 = scmp.lt.s32.totalorder (!%p235_p7), %s1746_s21, 1 }
  0x11   : > { %s1913_s8 = scalar_select %p151_p8, %s1738_s19, %s153_s7  }
  0x12   : > { %s2387_s0 = sld [smem:[#allocation3_spill]] (!%p235_p7)  ;;  %p282_p10 = scmp.lt.s32.totalorder (!%p235_p7), %s1915_s9, 2 }
  0x13   : > { %s274_s13 = sand.u32 (!%p235_p7), 1, %s1734_s18  }
  0x15   : > { %vm323_vm0 = vcmask 23552   ;;  %v1824_v1 = vmov 0.0   ;;  %v315_v3 = vld [vmem:[%s2380_s1] sm:$0xff]  ;;  %s296_s14 = scalar_select %p295_p9, %s1746_s21, 1  ;;  %v1825_v5 = vmov 0   ;;  %vm327_vm1 = vcmask 1042432  }
  0x16   : > { %398 = vmatprep.mubr.f32.mxu0 %v1824_v1  ;;  %484 = vmatprep.mubr.f32.mxu1 %v1824_v1  ;;  %s283_s15 = scalar_select %p282_p10, %s1915_s9, 2  ;;  %v812_v7 = vld [vmem:[%s2381_s2] sm:$0xff]  ;;  %v802_v28 = vlaneseq }
  0x17   : > { %1638 = vset.pattern.permute.xlu0 %v1825_v5  ;;  %s1448_s16 = smul.u32 3, %s296_s14  ;;  %s1409_s14 = sshll.u32 %s274_s13, 4 }
  0x18   : > { %v313_v0 = vld [vmem:[%s2387_s0] sm:$0xff]  ;;  %318 = vperm.xlu0 %1638, %v315_v3   ;;  %s284_s30 = scalar_lea.vmem %s2382_s3, %s283_s15  ;;  %v803_v33 = vshrl.u32 %v802_v28, 7  ;;  %s1941_s18 = scalar_lea.vmem [#allocation2], %s1409_s14  }
  0x19   : > { %v325_v2 = vsel %vm323_vm0, %v313_v0, 0  ;;  %s300_s6 = sadd.s32 %s1448_s16, %s283_s15  ;;  %v799_v9 = vld [vmem:[%s284_s30] sm:$0x3]  ;;  %s830_s15 = ssub.s32 (%p1902_p5), 3, %s1915_s9 }
  0x1a   : > { %v399_v4 = vand.u32 4294901760, %v325_v2  ;;  %s1412_s7 = sshll.u32 %s300_s6, 2  ;;  %vm800_vm2 = vcmp.ne.f32.partialorder %v799_v9, 0.0  ;;  %v804_v38 = vsub.s32 0, %v803_v33  ;;  %v808_v42 = vsub.s32 1, %v803_v33  ;;  %s1449_s16 = smul.u32 (%p1902_p5), 3, %s1746_s21 }
  0x1b   : > { %s302_s12 = scalar_lea.vmem %s2383_s4, %s1412_s7  ;;  %v1936_v10 = vsel %vm800_vm2, 1, %v1825_v5  ;;  %p831_p11 = scmp.lt.s32.totalorder (%p1902_p5), %s830_s15, 2 }
  0x1c   : > { %v400_v6 = vsub.f32 %v325_v2, %v399_v4  ;;  %815 = vperm.xlu0 %1638, %v812_v7   ;;  %v314_v11 = vld [vmem:[%s302_s12] sm:$0x77]  ;;  %v805_v47 = vrot.slane %v1936_v10, %v804_v38  ;;  %v809_v51 = vrot.slane %v1936_v10, %v808_v42  ;;  %s836_s17 = sadd.s32 (%p1902_p5), %s1449_s16, %s1915_s9 }
  0x1d   : > { %v322_v13 = vcombine.high %v314_v11, %v314_v11  ;;  %v328_v14 = vsel %vm327_vm1, %v314_v11, 0  ;;  %s1417_s20 = sshll.u32 (%p1902_p5), %s836_s17, 3 }
  0x1e   : > { %v401_v8 = vand.u32 4294901760, %v400_v6  ;;  %v364_v15 = vand.u32 4294901760, %v328_v14  ;;  %vm810_vm3 = vcmp.eq.s32.totalorder %v805_v47, 1  ;;  %vm811_vm4 = vcmp.eq.s32.totalorder %v809_v51, 1  ;;  %s1953_s6 = scalar_lea.vmem (%p1902_p5), %s2384_s5, %s1417_s20  }
  0x1f   : > { %v330_v16 = vsel %vm327_vm1, %v322_v13, 0 }
  0x20   : > { %v402_v12 = vsub.f32 %v400_v6, %v401_v8  ;;  %v362_v17 = vand.u32 4294901760, %v330_v16  ;;  %v447_v19 = vsub.f32 %v328_v14, %v364_v15 }
  0x22   : > { %v403_v18 = vand.u32 4294901760, %v402_v12  ;;  %363 = vmatprep.subr.mxu0 %v362_v17  ;;  %v441_v20 = vsub.f32 %v330_v16, %v362_v17  ;;  %v448_v21 = vand.u32 4294901760, %v447_v19 }
  0x23   : > { %365 = vmatpush1.msra.mxu0 %v364_v15 }
  0x24   : > { %404 = vmatmul.mubr.f32.vlgmr.msra.gmra.mxu0 %v403_v18  ;;  %v442_v22 = vand.u32 4294901760, %v441_v20  ;;  %524 = vmatprep.subr.mxu0 %v441_v20  ;;  %v449_v23 = vsub.f32 %v447_v19, %v448_v21 }
  0x25   : > { %527 = vmatpush1.msra.mxu0 %v447_v19  ;;  %560 = vmatprep.mubr.f32.mxu0 %v1824_v1 }
  0x26   : > { %v443_v24 = vsub.f32 %v441_v20, %v442_v22  ;;  %678 = vmatprep.subr.mxu0 %v442_v22  ;;  %v450_v25 = vand.u32 4294901760, %v449_v23 }
  0x28   : > { %v444_v26 = vand.u32 4294901760, %v443_v24  ;;  %563 = vmatmul.mubr.f32.vlgmr.msra.gmra.mxu0 %v400_v6 }
  0x29   : > { %682 = vmatpush1.msra.mxu0 %v448_v21  ;;  %715 = vmatprep.mubr.f32.mxu0 %v1824_v1 }
  0x2a   : > { %445 = vmatprep.subr.mxu1 %v444_v26 }
  0x2b   : > { %451 = vmatpush1.msra.mxu1 %v450_v25 }
  0x2c   : > { %486 = vmatmul.mubr.f32.vlgmr.msra.gmra.mxu1 %v399_v4  ;;  %600 = vmatprep.subr.mxu1 %v362_v17 }
  0x2d   : > { %602 = vmatpush1.msra.mxu1 %v364_v15  ;;  %635 = vmatprep.mubr.f32.mxu1 %v1824_v1 }
  0x2e   : > { %754 = vmatprep.subr.mxu1 %v362_v17  ;;  %717 = vmatmul.mubr.f32.vlgmr.msra.gmra.mxu0 %v399_v4 }
  0x30   : > { %639 = vmatmul.mubr.f32.vlgmr.msra.gmra.mxu1 %v401_v8 }
  0x31   : > { %756 = vmatpush1.msra.mxu1 %v364_v15  ;;  %789 = vmatprep.mubr.f32.mxu1 %v1824_v1 }
  0x34   : > { %791 = vmatmul.mubr.f32.vlgmr.msra.gmra.mxu1 %v399_v4 }
  0x93   : > { %v319_v30 = vpop.permute.xlu0 %318 }
  0x97   : > { %v816_v59 = vpop.permute.xlu0 %815 }
  0xe4   : > { %v405_v27 = vpop.f32.mrf.mxu0 }
  0xe5   : > { %v406_v32 = vadd.f32 %v405_v27, %v319_v30 }
  0xe6   : > { %v407_v29 = vpop.f32.mrf.mxu0 }
  0xe7   : > { %v408_v36 = vadd.f32 %v407_v29, %v319_v30 }
  0xe8   : > { %v564_v31 = vpop.f32.mrf.mxu0 }
  0xea   : > { %v566_v35 = vpop.f32.mrf.mxu0 }
  0xec   : > { %v487_v34 = vpop.f32.mrf.mxu1 }
  0xed   : > { %v488_v37 = vadd.f32 %v487_v34, %v406_v32 }
  0xee   : > { %v489_v39 = vpop.f32.mrf.mxu1  ;;  %v718_v44 = vpop.f32.mrf.mxu0 }
  0xef   : > { %v565_v40 = vadd.f32 %v564_v31, %v488_v37  ;;  %v490_v41 = vadd.f32 %v489_v39, %v408_v36 }
  0xf0   : > { %v640_v43 = vpop.f32.mrf.mxu1  ;;  %v720_v52 = vpop.f32.mrf.mxu0 }
  0xf1   : > { %v567_v45 = vadd.f32 %v566_v35, %v490_v41  ;;  %v641_v46 = vadd.f32 %v640_v43, %v565_v40 }
  0xf2   : > { %v642_v48 = vpop.f32.mrf.mxu1 }
  0xf3   : > { %v719_v49 = vadd.f32 %v718_v44, %v641_v46  ;;  %v643_v50 = vadd.f32 %v642_v48, %v567_v45 }
  0xf4   : > { %v792_v53 = vpop.f32.mrf.mxu1 }
  0xf5   : > { %v721_v54 = vadd.f32 %v720_v52, %v643_v50  ;;  %v793_v55 = vadd.f32 %v792_v53, %v719_v49 }
  0xf6   : > { %v794_v56 = vpop.f32.mrf.mxu1 }
  0xf7   : > { %v797_v57 = vmax.f32 %v793_v55, 0.0  ;;  %v795_v58 = vadd.f32 %v794_v56, %v721_v54 }
  0xf8   : > { %828 = sbr.rel (!%p1902_p5) target bundleno = 399 (0x18f), region = 44 }
  0xf9   : > { %v818_v60 = vsel %vm810_vm3, %v816_v59, %v797_v57  ;;  %v798_v61 = vmax.f32 %v795_v58, 0.0 }
  0xfa   : > { %820 = vst [vmem:[%s1941_s18] sm:$0xff] %v818_v60 }
  0xfb   : > { %v819_v62 = vsel %vm811_vm4, %v816_v59, %v798_v61 }
  0xfc   : > { %821 = vst [vmem:[%s1941_s18 + $0x8] sm:$0xff] %v819_v62 }
  0xfd   : > { %s2413_s15 = smov (!%p831_p11, %s830_s15), 2 }
  0xfe   : > { %s1415_s27 = sshll.u32 %s2413_s15, 7  ;;  %s1955_s7 = sshll.u32 %s2413_s15, 3 }
  0xff   : > { %p1419_p12 = scmp.eq.s32.totalorder %s1415_s27, 0 }
 0x100   : > { %p843_p13 = scmp.lt.u32.totalorder (!%p1419_p12), %s1955_s7, 8 }
 0x101   : > { %842 = sbr.rel (%p1419_p12) target bundleno = 399 (0x18f), region = 48 }
 0x106   : > { %846 = sbr.rel (%p843_p13) target bundleno = 390 (0x186), region = 52  ;;  %s1959_s29 = sand.u32 (!%p843_p13), 7, %s1955_s7  }
 0x107   : > { %p863_p0 = scmp.eq.s32.totalorder (!%p843_p13), %s1959_s29, 0  ;;  %p1420_p1 = scmp.ne.s32.totalorder (!%p843_p13), %s1959_s29, 0 }
 0x10b   : > { %866 = sbr.rel (%p1420_p1) target bundleno = 326 (0x146), region = 67  ;;  %s867_s21 = sshrl.u32 (!%p1420_p1), %s1955_s7, 3 }
 0x10c   : > { %s1966_s9 = sshrl.u32 (!%p1420_p1), %s867_s21, 6 }
 0x10d   : > { %p1421_p2 = scmp.le.s32.totalorder (!%p1420_p1), %s1966_s9, 0 }
 0x110   : > { %1315 = sbr.rel (%p1421_p2) target bundleno = 310 (0x136), region = 151  ;;  %s2388_s10 = smov (!%p1421_p2), %s1953_s6 }
 0x111   : > { %s2389_s11 = smov (!%p1421_p2), %s1941_s18  ;;  %s1975_s12 = smov (!%p1421_p2), 0  }
 0x112   : > { %s1977_s13 = smov (!%p1421_p2), 0  }
 0x115 LB: >> { %v880_v63 = vld [vmem:[%s1766_s11] sm:$0xff]  ;;  %v882_v0 = vld [vmem:[%s1766_s11 + $0x8] sm:$0xff]  ;;  %v884_v1 = vld [vmem:[%s1766_s11 + $0x10] sm:$0xff]  ;;  %s1008_s14 = sadd.s32 1, %s1770_s12  ;;  %s874_s13 = sadd.s32 1, %s1774_s13   ;;  %s1774_s13 = sphi %s1977_s13, %s874_s13   ;;  %s1770_s12 = sphi %s1975_s12, %s2392_s12   ;;  %s1766_s11 = sphi %s2389_s11, %s2391_s11   ;;  %s1762_s10 = sphi %s2388_s10, %s2390_s10  }
 0x116   : >> { %881 = vst [vmem:[%s1762_s10] sm:$0xff] %v880_v63  ;;  %883 = vst [vmem:[%s1762_s10 + $0x8] sm:$0xff] %v882_v0  ;;  %v886_v2 = vld [vmem:[%s1766_s11 + $0x18] sm:$0xff]  ;;  %v888_v3 = vld [vmem:[%s1766_s11 + $0x20] sm:$0xff]  ;;  %p1009_p3 = scmp.ge.s32.totalorder %s1008_s14, %s1966_s9  ;;  %p873_p4 = scmp.ge.s32.totalorder %s874_s13, %s1966_s9 }
 0x117   : >> { %885 = vst [vmem:[%s1762_s10 + $0x10] sm:$0xff] %v884_v1  ;;  %v890_v4 = vld [vmem:[%s1766_s11 + $0x28] sm:$0xff]  ;;  %887 = vst [vmem:[%s1762_s10 + $0x18] sm:$0xff] %v886_v2  ;;  %v892_v5 = vld [vmem:[%s1766_s11 + $0x30] sm:$0xff] }
 0x118   : >> { %889 = vst [vmem:[%s1762_s10 + $0x20] sm:$0xff] %v888_v3  ;;  %891 = vst [vmem:[%s1762_s10 + $0x28] sm:$0xff] %v890_v4  ;;  %v894_v6 = vld [vmem:[%s1766_s11 + $0x38] sm:$0xff]  ;;  %v896_v7 = vld [vmem:[%s1766_s11 + $0x40] sm:$0xff]  ;;  %s2415_s14 = smov (%p1009_p3, %s1008_s14), 0 }
 0x119   : >> { %893 = vst [vmem:[%s1762_s10 + $0x30] sm:$0xff] %v892_v5  ;;  %895 = vst [vmem:[%s1762_s10 + $0x38] sm:$0xff] %v894_v6  ;;  %v898_v8 = vld [vmem:[%s1766_s11 + $0x48] sm:$0xff]  ;;  %v900_v9 = vld [vmem:[%s1766_s11 + $0x50] sm:$0xff]  ;;  %s1422_s15 = sshll.u32 %s2415_s14, 9  ;;  %s2392_s12 = smov %s2415_s14 }
 0x11a   : >> { %897 = vst [vmem:[%s1762_s10 + $0x40] sm:$0xff] %v896_v7  ;;  %v902_v10 = vld [vmem:[%s1766_s11 + $0x58] sm:$0xff]  ;;  %899 = vst [vmem:[%s1762_s10 + $0x48] sm:$0xff] %v898_v8  ;;  %v904_v11 = vld [vmem:[%s1766_s11 + $0x60] sm:$0xff]  ;;  %s2033_s16 = scalar_lea.vmem %s1941_s18, %s1422_s15 [#allocation2]   ;;  %s2036_s17 = scalar_lea.vmem %s1953_s6, %s1422_s15  }
 0x11b   : >> { %901 = vst [vmem:[%s1762_s10 + $0x50] sm:$0xff] %v900_v9  ;;  %903 = vst [vmem:[%s1762_s10 + $0x58] sm:$0xff] %v902_v10  ;;  %v906_v12 = vld [vmem:[%s1766_s11 + $0x68] sm:$0xff]  ;;  %v908_v13 = vld [vmem:[%s1766_s11 + $0x70] sm:$0xff] }
 0x11c   : >> { %905 = vst [vmem:[%s1762_s10 + $0x60] sm:$0xff] %v904_v11  ;;  %907 = vst [vmem:[%s1762_s10 + $0x68] sm:$0xff] %v906_v12  ;;  %v910_v14 = vld [vmem:[%s1766_s11 + $0x78] sm:$0xff]  ;;  %v912_v15 = vld [vmem:[%s1766_s11 + $0x80] sm:$0xff] }
 0x11d   : >> { %909 = vst [vmem:[%s1762_s10 + $0x70] sm:$0xff] %v908_v13  ;;  %v914_v16 = vld [vmem:[%s1766_s11 + $0x88] sm:$0xff]  ;;  %911 = vst [vmem:[%s1762_s10 + $0x78] sm:$0xff] %v910_v14  ;;  %v916_v17 = vld [vmem:[%s1766_s11 + $0x90] sm:$0xff] }
 0x11e   : >> { %913 = vst [vmem:[%s1762_s10 + $0x80] sm:$0xff] %v912_v15  ;;  %915 = vst [vmem:[%s1762_s10 + $0x88] sm:$0xff] %v914_v16  ;;  %v918_v18 = vld [vmem:[%s1766_s11 + $0x98] sm:$0xff]  ;;  %v920_v19 = vld [vmem:[%s1766_s11 + $0xa0] sm:$0xff] }
 0x11f   : >> { %917 = vst [vmem:[%s1762_s10 + $0x90] sm:$0xff] %v916_v17  ;;  %919 = vst [vmem:[%s1762_s10 + $0x98] sm:$0xff] %v918_v18  ;;  %v922_v20 = vld [vmem:[%s1766_s11 + $0xa8] sm:$0xff]  ;;  %v924_v21 = vld [vmem:[%s1766_s11 + $0xb0] sm:$0xff] }
 0x120   : >> { %921 = vst [vmem:[%s1762_s10 + $0xa0] sm:$0xff] %v920_v19  ;;  %v926_v22 = vld [vmem:[%s1766_s11 + $0xb8] sm:$0xff]  ;;  %923 = vst [vmem:[%s1762_s10 + $0xa8] sm:$0xff] %v922_v20  ;;  %v928_v23 = vld [vmem:[%s1766_s11 + $0xc0] sm:$0xff] }
 0x121   : >> { %925 = vst [vmem:[%s1762_s10 + $0xb0] sm:$0xff] %v924_v21  ;;  %927 = vst [vmem:[%s1762_s10 + $0xb8] sm:$0xff] %v926_v22  ;;  %v930_v24 = vld [vmem:[%s1766_s11 + $0xc8] sm:$0xff]  ;;  %v932_v25 = vld [vmem:[%s1766_s11 + $0xd0] sm:$0xff] }
 0x122   : >> { %929 = vst [vmem:[%s1762_s10 + $0xc0] sm:$0xff] %v928_v23  ;;  %931 = vst [vmem:[%s1762_s10 + $0xc8] sm:$0xff] %v930_v24  ;;  %v934_v26 = vld [vmem:[%s1766_s11 + $0xd8] sm:$0xff]  ;;  %v936_v27 = vld [vmem:[%s1766_s11 + $0xe0] sm:$0xff] }
 0x123   : >> { %933 = vst [vmem:[%s1762_s10 + $0xd0] sm:$0xff] %v932_v25  ;;  %v938_v28 = vld [vmem:[%s1766_s11 + $0xe8] sm:$0xff]  ;;  %935 = vst [vmem:[%s1762_s10 + $0xd8] sm:$0xff] %v934_v26  ;;  %v940_v29 = vld [vmem:[%s1766_s11 + $0xf0] sm:$0xff] }
 0x124   : >> { %937 = vst [vmem:[%s1762_s10 + $0xe0] sm:$0xff] %v936_v27  ;;  %939 = vst [vmem:[%s1762_s10 + $0xe8] sm:$0xff] %v938_v28  ;;  %v942_v30 = vld [vmem:[%s1766_s11 + $0xf8] sm:$0xff]  ;;  %v944_v31 = vld [vmem:[%s1766_s11 + $0x100] sm:$0xff] }
 0x125   : >> { %941 = vst [vmem:[%s1762_s10 + $0xf0] sm:$0xff] %v940_v29  ;;  %943 = vst [vmem:[%s1762_s10 + $0xf8] sm:$0xff] %v942_v30  ;;  %v946_v32 = vld [vmem:[%s1766_s11 + $0x108] sm:$0xff]  ;;  %v948_v33 = vld [vmem:[%s1766_s11 + $0x110] sm:$0xff] }
 0x126   : >> { %945 = vst [vmem:[%s1762_s10 + $0x100] sm:$0xff] %v944_v31  ;;  %v950_v34 = vld [vmem:[%s1766_s11 + $0x118] sm:$0xff]  ;;  %947 = vst [vmem:[%s1762_s10 + $0x108] sm:$0xff] %v946_v32  ;;  %v952_v35 = vld [vmem:[%s1766_s11 + $0x120] sm:$0xff] }
 0x127   : >> { %949 = vst [vmem:[%s1762_s10 + $0x110] sm:$0xff] %v948_v33  ;;  %951 = vst [vmem:[%s1762_s10 + $0x118] sm:$0xff] %v950_v34  ;;  %v954_v36 = vld [vmem:[%s1766_s11 + $0x128] sm:$0xff]  ;;  %v956_v37 = vld [vmem:[%s1766_s11 + $0x130] sm:$0xff] }
 0x128   : >> { %953 = vst [vmem:[%s1762_s10 + $0x120] sm:$0xff] %v952_v35  ;;  %955 = vst [vmem:[%s1762_s10 + $0x128] sm:$0xff] %v954_v36  ;;  %v958_v38 = vld [vmem:[%s1766_s11 + $0x138] sm:$0xff]  ;;  %v960_v39 = vld [vmem:[%s1766_s11 + $0x140] sm:$0xff] }
 0x129   : >> { %957 = vst [vmem:[%s1762_s10 + $0x130] sm:$0xff] %v956_v37  ;;  %v962_v40 = vld [vmem:[%s1766_s11 + $0x148] sm:$0xff]  ;;  %959 = vst [vmem:[%s1762_s10 + $0x138] sm:$0xff] %v958_v38  ;;  %v964_v41 = vld [vmem:[%s1766_s11 + $0x150] sm:$0xff] }
 0x12a   : >> { %961 = vst [vmem:[%s1762_s10 + $0x140] sm:$0xff] %v960_v39  ;;  %963 = vst [vmem:[%s1762_s10 + $0x148] sm:$0xff] %v962_v40  ;;  %v966_v42 = vld [vmem:[%s1766_s11 + $0x158] sm:$0xff]  ;;  %v968_v43 = vld [vmem:[%s1766_s11 + $0x160] sm:$0xff] }
 0x12b   : >> { %965 = vst [vmem:[%s1762_s10 + $0x150] sm:$0xff] %v964_v41  ;;  %967 = vst [vmem:[%s1762_s10 + $0x158] sm:$0xff] %v966_v42  ;;  %v970_v44 = vld [vmem:[%s1766_s11 + $0x168] sm:$0xff]  ;;  %v972_v45 = vld [vmem:[%s1766_s11 + $0x170] sm:$0xff] }
 0x12c   : >> { %969 = vst [vmem:[%s1762_s10 + $0x160] sm:$0xff] %v968_v43  ;;  %v974_v46 = vld [vmem:[%s1766_s11 + $0x178] sm:$0xff]  ;;  %971 = vst [vmem:[%s1762_s10 + $0x168] sm:$0xff] %v970_v44  ;;  %v976_v47 = vld [vmem:[%s1766_s11 + $0x180] sm:$0xff] }
 0x12d   : >> { %973 = vst [vmem:[%s1762_s10 + $0x170] sm:$0xff] %v972_v45  ;;  %975 = vst [vmem:[%s1762_s10 + $0x178] sm:$0xff] %v974_v46  ;;  %v978_v48 = vld [vmem:[%s1766_s11 + $0x188] sm:$0xff]  ;;  %v980_v49 = vld [vmem:[%s1766_s11 + $0x190] sm:$0xff] }
 0x12e   : >> { %977 = vst [vmem:[%s1762_s10 + $0x180] sm:$0xff] %v976_v47  ;;  %979 = vst [vmem:[%s1762_s10 + $0x188] sm:$0xff] %v978_v48  ;;  %v982_v50 = vld [vmem:[%s1766_s11 + $0x198] sm:$0xff]  ;;  %v984_v51 = vld [vmem:[%s1766_s11 + $0x1a0] sm:$0xff] }
 0x12f   : >> { %981 = vst [vmem:[%s1762_s10 + $0x190] sm:$0xff] %v980_v49  ;;  %v986_v52 = vld [vmem:[%s1766_s11 + $0x1a8] sm:$0xff]  ;;  %983 = vst [vmem:[%s1762_s10 + $0x198] sm:$0xff] %v982_v50  ;;  %v988_v53 = vld [vmem:[%s1766_s11 + $0x1b0] sm:$0xff] }
 0x130   : >> { %985 = vst [vmem:[%s1762_s10 + $0x1a0] sm:$0xff] %v984_v51  ;;  %987 = vst [vmem:[%s1762_s10 + $0x1a8] sm:$0xff] %v986_v52  ;;  %v990_v54 = vld [vmem:[%s1766_s11 + $0x1b8] sm:$0xff]  ;;  %v992_v55 = vld [vmem:[%s1766_s11 + $0x1c0] sm:$0xff] }
 0x131   : >> { %989 = vst [vmem:[%s1762_s10 + $0x1b0] sm:$0xff] %v988_v53  ;;  %991 = vst [vmem:[%s1762_s10 + $0x1b8] sm:$0xff] %v990_v54  ;;  %v994_v56 = vld [vmem:[%s1766_s11 + $0x1c8] sm:$0xff]  ;;  %v996_v57 = vld [vmem:[%s1766_s11 + $0x1d0] sm:$0xff]  ;;  %876 = sbr.rel (!%p873_p4) target bundleno = 277 (0x115), region = 157 }
 0x132   : >> { %993 = vst [vmem:[%s1762_s10 + $0x1c0] sm:$0xff] %v992_v55  ;;  %v998_v58 = vld [vmem:[%s1766_s11 + $0x1d8] sm:$0xff]  ;;  %995 = vst [vmem:[%s1762_s10 + $0x1c8] sm:$0xff] %v994_v56  ;;  %v1000_v59 = vld [vmem:[%s1766_s11 + $0x1e0] sm:$0xff] }
 0x133   : >> { %997 = vst [vmem:[%s1762_s10 + $0x1d0] sm:$0xff] %v996_v57  ;;  %999 = vst [vmem:[%s1762_s10 + $0x1d8] sm:$0xff] %v998_v58  ;;  %v1002_v60 = vld [vmem:[%s1766_s11 + $0x1e8] sm:$0xff]  ;;  %v1004_v61 = vld [vmem:[%s1766_s11 + $0x1f0] sm:$0xff] }
 0x134   : >> { %1001 = vst [vmem:[%s1762_s10 + $0x1e0] sm:$0xff] %v1000_v59  ;;  %1003 = vst [vmem:[%s1762_s10 + $0x1e8] sm:$0xff] %v1002_v60  ;;  %v1006_v62 = vld [vmem:[%s1766_s11 + $0x1f8] sm:$0xff]  ;;  %s2391_s11 = smov %s2033_s16 }
 0x135   : >> { %1005 = vst [vmem:[%s1762_s10 + $0x1f0] sm:$0xff] %v1004_v61  ;;  %1007 = vst [vmem:[%s1762_s10 + $0x1f8] sm:$0xff] %v1006_v62  ;;  %s2390_s10 = smov %s2036_s17 }
 0x136 PF: > { %s2142_s20 = sand.u32 63, %s867_s21   ;;  %s1444_s27 = sshll.u32 %s1966_s9, 13 }
 0x137   : > { %s1019_s28 = sshra.s32 %s1444_s27, 4  ;;  %p1427_p5 = scmp.le.s32.totalorder %s2142_s20, 0 }
 0x138   : > { %s1020_s30 = scalar_lea.vmem %s1941_s18, %s1019_s28 [#allocation2]   ;;  %s1023_s15 = scalar_lea.vmem %s1953_s6, %s1019_s28  }
 0x139   : > { %1329 = sbr.rel (%p1427_p5) target bundleno = 326 (0x146), region = 162  ;;  %s1776_s16 = smov (!%p1427_p5), %s1023_s15  }
 0x13a   : > { %s1780_s14 = smov (!%p1427_p5), %s1020_s30   ;;  %s1784_s17 = smov (!%p1427_p5), 0  }
 0x13b   : > { %s1788_s13 = smov (!%p1427_p5), 0  }
 0x13e LB: >> { %v1035_v63 = vld [vmem:[%s1782_s14] sm:$0xff]  ;;  %s1037_s21 = sadd.s32 1, %s1786_s17  ;;  %s1029_s13 = sadd.s32 1, %s1790_s13   ;;  %s1790_s13 = sphi %s1788_s13, %s1029_s13   ;;  %s1786_s17 = sphi %s1784_s17, %s1785_s17   ;;  %s1782_s14 = sphi %s1780_s14, %s1042_s14   ;;  %s1778_s16 = sphi %s1776_s16, %s1043_s16  }
 0x13f   : >> { %1036 = vst [vmem:[%s1778_s16] sm:$0xff] %v1035_v63  ;;  %p1038_p6 = scmp.ge.s32.totalorder %s1037_s21, %s2142_s20  ;;  %p1028_p7 = scmp.ge.s32.totalorder %s1029_s13, %s2142_s20 }
 0x141   : >> { %s2417_s21 = smov (%p1038_p6, %s1037_s21), 0  ;;  %1031 = sbr.rel (!%p1028_p7) target bundleno = 318 (0x13e), region = 168 }
 0x142   : >> { %s1428_s9 = sshll.u32 %s2417_s21, 3  ;;  %s1785_s17 = smov %s2417_s21  }
 0x143   : >> { %s1042_s14 = scalar_lea.vmem %s1020_s30, %s1428_s9 [#allocation2]   ;;  %s1043_s16 = scalar_lea.vmem %s1023_s15, %s1428_s9  }
 0x146 PF: > { %1046 = sbr.rel (%p863_p0) target bundleno = 390 (0x186), region = 85  ;;  %s2154_s10 = ssub.s32 (!%p863_p0), %s1955_s7, %s1959_s29 }
 0x147   : > { %s1052_s11 = sshrl.u32 (!%p863_p0), %s1955_s7, 3 }
 0x148   : > { %s2163_s28 = sshrl.u32 (!%p863_p0), %s1052_s11, 6 }
 0x149   : > { %p1430_p8 = scmp.le.s32.totalorder (!%p863_p0), %s2163_s28, 0 }
 0x14b   : > { %1343 = sbr.rel (%p1430_p8) target bundleno = 369 (0x171), region = 173  ;;  %s2393_s20 = smov (!%p1430_p8), %s1953_s6 }
 0x14c   : > { %s2394_s30 = smov (!%p1430_p8), %s1941_s18  ;;  %s2172_s15 = smov (!%p1430_p8), 0  }
 0x14d   : > { %s2174_s16 = smov (!%p1430_p8), 0  }
 0x150 LB: >> { %v1065_v0 = vld [vmem:[%s1798_s30] sm:$0xff]  ;;  %v1067_v1 = vld [vmem:[%s1798_s30 + $0x8] sm:$0xff]  ;;  %v1069_v2 = vld [vmem:[%s1798_s30 + $0x10] sm:$0xff]  ;;  %s1193_s14 = sadd.s32 1, %s1802_s15  ;;  %s1059_s16 = sadd.s32 1, %s1806_s16   ;;  %s1806_s16 = sphi %s2174_s16, %s1059_s16   ;;  %s1802_s15 = sphi %s2172_s15, %s2397_s15   ;;  %s1798_s30 = sphi %s2394_s30, %s2396_s30   ;;  %s1794_s20 = sphi %s2393_s20, %s2395_s20  }
 0x151   : >> { %1066 = vst [vmem:[%s1794_s20] sm:$0xff] %v1065_v0  ;;  %1068 = vst [vmem:[%s1794_s20 + $0x8] sm:$0xff] %v1067_v1  ;;  %v1071_v3 = vld [vmem:[%s1798_s30 + $0x18] sm:$0xff]  ;;  %v1073_v4 = vld [vmem:[%s1798_s30 + $0x20] sm:$0xff]  ;;  %p1194_p9 = scmp.ge.s32.totalorder %s1193_s14, %s2163_s28  ;;  %p1058_p10 = scmp.ge.s32.totalorder %s1059_s16, %s2163_s28 }
 0x152   : >> { %1070 = vst [vmem:[%s1794_s20 + $0x10] sm:$0xff] %v1069_v2  ;;  %v1075_v5 = vld [vmem:[%s1798_s30 + $0x28] sm:$0xff]  ;;  %1072 = vst [vmem:[%s1794_s20 + $0x18] sm:$0xff] %v1071_v3  ;;  %v1077_v6 = vld [vmem:[%s1798_s30 + $0x30] sm:$0xff] }
 0x153   : >> { %1074 = vst [vmem:[%s1794_s20 + $0x20] sm:$0xff] %v1073_v4  ;;  %1076 = vst [vmem:[%s1794_s20 + $0x28] sm:$0xff] %v1075_v5  ;;  %v1079_v7 = vld [vmem:[%s1798_s30 + $0x38] sm:$0xff]  ;;  %v1081_v8 = vld [vmem:[%s1798_s30 + $0x40] sm:$0xff]  ;;  %s2419_s14 = smov (%p1194_p9, %s1193_s14), 0 }
 0x154   : >> { %1078 = vst [vmem:[%s1794_s20 + $0x30] sm:$0xff] %v1077_v6  ;;  %1080 = vst [vmem:[%s1794_s20 + $0x38] sm:$0xff] %v1079_v7  ;;  %v1083_v9 = vld [vmem:[%s1798_s30 + $0x48] sm:$0xff]  ;;  %v1085_v10 = vld [vmem:[%s1798_s30 + $0x50] sm:$0xff]  ;;  %s1431_s17 = sshll.u32 %s2419_s14, 9  ;;  %s2397_s15 = smov %s2419_s14 }
 0x155   : >> { %1082 = vst [vmem:[%s1794_s20 + $0x40] sm:$0xff] %v1081_v8  ;;  %v1087_v11 = vld [vmem:[%s1798_s30 + $0x58] sm:$0xff]  ;;  %1084 = vst [vmem:[%s1794_s20 + $0x48] sm:$0xff] %v1083_v9  ;;  %v1089_v12 = vld [vmem:[%s1798_s30 + $0x60] sm:$0xff]  ;;  %s2230_s13 = scalar_lea.vmem %s1941_s18, %s1431_s17 [#allocation2]   ;;  %s2233_s21 = scalar_lea.vmem %s1953_s6, %s1431_s17  }
 0x156   : >> { %1086 = vst [vmem:[%s1794_s20 + $0x50] sm:$0xff] %v1085_v10  ;;  %1088 = vst [vmem:[%s1794_s20 + $0x58] sm:$0xff] %v1087_v11  ;;  %v1091_v13 = vld [vmem:[%s1798_s30 + $0x68] sm:$0xff]  ;;  %v1093_v14 = vld [vmem:[%s1798_s30 + $0x70] sm:$0xff] }
 0x157   : >> { %1090 = vst [vmem:[%s1794_s20 + $0x60] sm:$0xff] %v1089_v12  ;;  %1092 = vst [vmem:[%s1794_s20 + $0x68] sm:$0xff] %v1091_v13  ;;  %v1095_v15 = vld [vmem:[%s1798_s30 + $0x78] sm:$0xff]  ;;  %v1097_v16 = vld [vmem:[%s1798_s30 + $0x80] sm:$0xff] }
 0x158   : >> { %1094 = vst [vmem:[%s1794_s20 + $0x70] sm:$0xff] %v1093_v14  ;;  %v1099_v17 = vld [vmem:[%s1798_s30 + $0x88] sm:$0xff]  ;;  %1096 = vst [vmem:[%s1794_s20 + $0x78] sm:$0xff] %v1095_v15  ;;  %v1101_v18 = vld [vmem:[%s1798_s30 + $0x90] sm:$0xff] }
 0x159   : >> { %1098 = vst [vmem:[%s1794_s20 + $0x80] sm:$0xff] %v1097_v16  ;;  %1100 = vst [vmem:[%s1794_s20 + $0x88] sm:$0xff] %v1099_v17  ;;  %v1103_v19 = vld [vmem:[%s1798_s30 + $0x98] sm:$0xff]  ;;  %v1105_v20 = vld [vmem:[%s1798_s30 + $0xa0] sm:$0xff] }
 0x15a   : >> { %1102 = vst [vmem:[%s1794_s20 + $0x90] sm:$0xff] %v1101_v18  ;;  %1104 = vst [vmem:[%s1794_s20 + $0x98] sm:$0xff] %v1103_v19  ;;  %v1107_v21 = vld [vmem:[%s1798_s30 + $0xa8] sm:$0xff]  ;;  %v1109_v22 = vld [vmem:[%s1798_s30 + $0xb0] sm:$0xff] }
 0x15b   : >> { %1106 = vst [vmem:[%s1794_s20 + $0xa0] sm:$0xff] %v1105_v20  ;;  %v1111_v23 = vld [vmem:[%s1798_s30 + $0xb8] sm:$0xff]  ;;  %1108 = vst [vmem:[%s1794_s20 + $0xa8] sm:$0xff] %v1107_v21  ;;  %v1113_v24 = vld [vmem:[%s1798_s30 + $0xc0] sm:$0xff] }
 0x15c   : >> { %1110 = vst [vmem:[%s1794_s20 + $0xb0] sm:$0xff] %v1109_v22  ;;  %1112 = vst [vmem:[%s1794_s20 + $0xb8] sm:$0xff] %v1111_v23  ;;  %v1115_v25 = vld [vmem:[%s1798_s30 + $0xc8] sm:$0xff]  ;;  %v1117_v26 = vld [vmem:[%s1798_s30 + $0xd0] sm:$0xff] }
 0x15d   : >> { %1114 = vst [vmem:[%s1794_s20 + $0xc0] sm:$0xff] %v1113_v24  ;;  %1116 = vst [vmem:[%s1794_s20 + $0xc8] sm:$0xff] %v1115_v25  ;;  %v1119_v27 = vld [vmem:[%s1798_s30 + $0xd8] sm:$0xff]  ;;  %v1121_v28 = vld [vmem:[%s1798_s30 + $0xe0] sm:$0xff] }
 0x15e   : >> { %1118 = vst [vmem:[%s1794_s20 + $0xd0] sm:$0xff] %v1117_v26  ;;  %v1123_v29 = vld [vmem:[%s1798_s30 + $0xe8] sm:$0xff]  ;;  %1120 = vst [vmem:[%s1794_s20 + $0xd8] sm:$0xff] %v1119_v27  ;;  %v1125_v30 = vld [vmem:[%s1798_s30 + $0xf0] sm:$0xff] }
 0x15f   : >> { %1122 = vst [vmem:[%s1794_s20 + $0xe0] sm:$0xff] %v1121_v28  ;;  %1124 = vst [vmem:[%s1794_s20 + $0xe8] sm:$0xff] %v1123_v29  ;;  %v1127_v31 = vld [vmem:[%s1798_s30 + $0xf8] sm:$0xff]  ;;  %v1129_v32 = vld [vmem:[%s1798_s30 + $0x100] sm:$0xff] }
 0x160   : >> { %1126 = vst [vmem:[%s1794_s20 + $0xf0] sm:$0xff] %v1125_v30  ;;  %1128 = vst [vmem:[%s1794_s20 + $0xf8] sm:$0xff] %v1127_v31  ;;  %v1131_v33 = vld [vmem:[%s1798_s30 + $0x108] sm:$0xff]  ;;  %v1133_v34 = vld [vmem:[%s1798_s30 + $0x110] sm:$0xff] }
 0x161   : >> { %1130 = vst [vmem:[%s1794_s20 + $0x100] sm:$0xff] %v1129_v32  ;;  %v1135_v35 = vld [vmem:[%s1798_s30 + $0x118] sm:$0xff]  ;;  %1132 = vst [vmem:[%s1794_s20 + $0x108] sm:$0xff] %v1131_v33  ;;  %v1137_v36 = vld [vmem:[%s1798_s30 + $0x120] sm:$0xff] }
 0x162   : >> { %1134 = vst [vmem:[%s1794_s20 + $0x110] sm:$0xff] %v1133_v34  ;;  %1136 = vst [vmem:[%s1794_s20 + $0x118] sm:$0xff] %v1135_v35  ;;  %v1139_v37 = vld [vmem:[%s1798_s30 + $0x128] sm:$0xff]  ;;  %v1141_v38 = vld [vmem:[%s1798_s30 + $0x130] sm:$0xff] }
 0x163   : >> { %1138 = vst [vmem:[%s1794_s20 + $0x120] sm:$0xff] %v1137_v36  ;;  %1140 = vst [vmem:[%s1794_s20 + $0x128] sm:$0xff] %v1139_v37  ;;  %v1143_v39 = vld [vmem:[%s1798_s30 + $0x138] sm:$0xff]  ;;  %v1145_v40 = vld [vmem:[%s1798_s30 + $0x140] sm:$0xff] }
 0x164   : >> { %1142 = vst [vmem:[%s1794_s20 + $0x130] sm:$0xff] %v1141_v38  ;;  %v1147_v41 = vld [vmem:[%s1798_s30 + $0x148] sm:$0xff]  ;;  %1144 = vst [vmem:[%s1794_s20 + $0x138] sm:$0xff] %v1143_v39  ;;  %v1149_v42 = vld [vmem:[%s1798_s30 + $0x150] sm:$0xff] }
 0x165   : >> { %1146 = vst [vmem:[%s1794_s20 + $0x140] sm:$0xff] %v1145_v40  ;;  %1148 = vst [vmem:[%s1794_s20 + $0x148] sm:$0xff] %v1147_v41  ;;  %v1151_v43 = vld [vmem:[%s1798_s30 + $0x158] sm:$0xff]  ;;  %v1153_v44 = vld [vmem:[%s1798_s30 + $0x160] sm:$0xff] }
 0x166   : >> { %1150 = vst [vmem:[%s1794_s20 + $0x150] sm:$0xff] %v1149_v42  ;;  %1152 = vst [vmem:[%s1794_s20 + $0x158] sm:$0xff] %v1151_v43  ;;  %v1155_v45 = vld [vmem:[%s1798_s30 + $0x168] sm:$0xff]  ;;  %v1157_v46 = vld [vmem:[%s1798_s30 + $0x170] sm:$0xff] }
 0x167   : >> { %1154 = vst [vmem:[%s1794_s20 + $0x160] sm:$0xff] %v1153_v44  ;;  %v1159_v47 = vld [vmem:[%s1798_s30 + $0x178] sm:$0xff]  ;;  %1156 = vst [vmem:[%s1794_s20 + $0x168] sm:$0xff] %v1155_v45  ;;  %v1161_v48 = vld [vmem:[%s1798_s30 + $0x180] sm:$0xff] }
 0x168   : >> { %1158 = vst [vmem:[%s1794_s20 + $0x170] sm:$0xff] %v1157_v46  ;;  %1160 = vst [vmem:[%s1794_s20 + $0x178] sm:$0xff] %v1159_v47  ;;  %v1163_v49 = vld [vmem:[%s1798_s30 + $0x188] sm:$0xff]  ;;  %v1165_v50 = vld [vmem:[%s1798_s30 + $0x190] sm:$0xff] }
 0x169   : >> { %1162 = vst [vmem:[%s1794_s20 + $0x180] sm:$0xff] %v1161_v48  ;;  %1164 = vst [vmem:[%s1794_s20 + $0x188] sm:$0xff] %v1163_v49  ;;  %v1167_v51 = vld [vmem:[%s1798_s30 + $0x198] sm:$0xff]  ;;  %v1169_v52 = vld [vmem:[%s1798_s30 + $0x1a0] sm:$0xff] }
 0x16a   : >> { %1166 = vst [vmem:[%s1794_s20 + $0x190] sm:$0xff] %v1165_v50  ;;  %v1171_v53 = vld [vmem:[%s1798_s30 + $0x1a8] sm:$0xff]  ;;  %1168 = vst [vmem:[%s1794_s20 + $0x198] sm:$0xff] %v1167_v51  ;;  %v1173_v54 = vld [vmem:[%s1798_s30 + $0x1b0] sm:$0xff] }
 0x16b   : >> { %1170 = vst [vmem:[%s1794_s20 + $0x1a0] sm:$0xff] %v1169_v52  ;;  %1172 = vst [vmem:[%s1794_s20 + $0x1a8] sm:$0xff] %v1171_v53  ;;  %v1175_v55 = vld [vmem:[%s1798_s30 + $0x1b8] sm:$0xff]  ;;  %v1177_v56 = vld [vmem:[%s1798_s30 + $0x1c0] sm:$0xff] }
 0x16c   : >> { %1174 = vst [vmem:[%s1794_s20 + $0x1b0] sm:$0xff] %v1173_v54  ;;  %1176 = vst [vmem:[%s1794_s20 + $0x1b8] sm:$0xff] %v1175_v55  ;;  %v1179_v57 = vld [vmem:[%s1798_s30 + $0x1c8] sm:$0xff]  ;;  %v1181_v58 = vld [vmem:[%s1798_s30 + $0x1d0] sm:$0xff]  ;;  %1061 = sbr.rel (!%p1058_p10) target bundleno = 336 (0x150), region = 179 }
 0x16d   : >> { %1178 = vst [vmem:[%s1794_s20 + $0x1c0] sm:$0xff] %v1177_v56  ;;  %v1183_v59 = vld [vmem:[%s1798_s30 + $0x1d8] sm:$0xff]  ;;  %1180 = vst [vmem:[%s1794_s20 + $0x1c8] sm:$0xff] %v1179_v57  ;;  %v1185_v60 = vld [vmem:[%s1798_s30 + $0x1e0] sm:$0xff] }
 0x16e   : >> { %1182 = vst [vmem:[%s1794_s20 + $0x1d0] sm:$0xff] %v1181_v58  ;;  %1184 = vst [vmem:[%s1794_s20 + $0x1d8] sm:$0xff] %v1183_v59  ;;  %v1187_v61 = vld [vmem:[%s1798_s30 + $0x1e8] sm:$0xff]  ;;  %v1189_v62 = vld [vmem:[%s1798_s30 + $0x1f0] sm:$0xff] }
 0x16f   : >> { %1186 = vst [vmem:[%s1794_s20 + $0x1e0] sm:$0xff] %v1185_v60  ;;  %1188 = vst [vmem:[%s1794_s20 + $0x1e8] sm:$0xff] %v1187_v61  ;;  %v1191_v63 = vld [vmem:[%s1798_s30 + $0x1f8] sm:$0xff]  ;;  %s2396_s30 = smov %s2230_s13 }
 0x170   : >> { %1190 = vst [vmem:[%s1794_s20 + $0x1f0] sm:$0xff] %v1189_v62  ;;  %1192 = vst [vmem:[%s1794_s20 + $0x1f8] sm:$0xff] %v1191_v63  ;;  %s2395_s20 = smov %s2233_s21 }
 0x171 PF: > { %s2339_s9 = sand.u32 63, %s1052_s11   ;;  %s1446_s17 = sshll.u32 %s2163_s28, 13 }
 0x172   : > { %s1204_s27 = sshra.s32 %s1446_s17, 4  ;;  %p1436_p11 = scmp.le.s32.totalorder %s2339_s9, 0 }
 0x173   : > { %s1205_s12 = scalar_lea.vmem %s1941_s18, %s1204_s27 [#allocation2]   ;;  %s1208_s0 = scalar_lea.vmem %s1953_s6, %s1204_s27  }
 0x174   : > { %1357 = sbr.rel (%p1436_p11) target bundleno = 385 (0x181), region = 184  ;;  %s1808_s13 = smov (!%p1436_p11), %s1208_s0  }
 0x175   : > { %s1812_s14 = smov (!%p1436_p11), %s1205_s12   ;;  %s1816_s21 = smov (!%p1436_p11), 0  }
 0x176   : > { %s1820_s16 = smov (!%p1436_p11), 0  }
 0x179 LB: >> { %v1220_v0 = vld [vmem:[%s1814_s14] sm:$0xff]  ;;  %s1222_s11 = sadd.s32 1, %s1818_s21  ;;  %s1214_s16 = sadd.s32 1, %s1822_s16   ;;  %s1822_s16 = sphi %s1820_s16, %s1214_s16   ;;  %s1818_s21 = sphi %s1816_s21, %s1817_s21   ;;  %s1814_s14 = sphi %s1812_s14, %s1227_s14   ;;  %s1810_s13 = sphi %s1808_s13, %s1228_s13  }
 0x17a   : >> { %1221 = vst [vmem:[%s1810_s13] sm:$0xff] %v1220_v0  ;;  %p1223_p12 = scmp.ge.s32.totalorder %s1222_s11, %s2339_s9  ;;  %p1213_p13 = scmp.ge.s32.totalorder %s1214_s16, %s2339_s9 }
 0x17c   : >> { %s2421_s11 = smov (%p1223_p12, %s1222_s11), 0  ;;  %1216 = sbr.rel (!%p1213_p13) target bundleno = 377 (0x179), region = 190 }
 0x17d   : >> { %s1437_s27 = sshll.u32 %s2421_s11, 3  ;;  %s1817_s21 = smov %s2421_s11  }
 0x17e   : >> { %s1227_s14 = scalar_lea.vmem %s1205_s12, %s1437_s27 [#allocation2]   ;;  %s1228_s13 = scalar_lea.vmem %s1208_s0, %s1437_s27  }
 0x181 PF: > { %s1826_s28 = smov 1   ;;  %s2398_s15 = scalar_lea.vmem %s1941_s18, %s2154_s10 [#allocation2] }
 0x182   : > { %s1229_s20 = sshll.u32 %s1826_s28, %s1959_s29  ;;  %s2399_s17 = scalar_lea.vmem %s1953_s6, %s2154_s10 }
 0x183   : > { %s1439_s30 = sadd.s32 4294967295, %s1229_s20 }
 0x184   : > { %v1239_v1 = vld [vmem:[%s2398_s15] sm:%s1439_s30] }
 0x185   : > { %1240 = vst [vmem:[%s2399_s17] sm:%s1439_s30] %v1239_v1 }
 0x186 PF: > { %p1440_p0 = scmp.ge.u32.totalorder %s1955_s7, 8 }
 0x187   : > { %s1827_s13 = smov (!%p1440_p0), 1  }
 0x188   : > { %849 = sbr.rel (%p1440_p0) target bundleno = 399 (0x18f), region = 56  ;;  %s850_s0 = sshll.u32 (!%p1440_p0), %s1827_s13, %s1955_s7 }
 0x189   : > { %s1441_s12 = sadd.s32 (!%p1440_p0), 4294967295, %s850_s0 }
 0x18d   : > { %v860_v2 = vld [vmem:[%s1941_s18] sm:%s1441_s12] }
 0x18e   : > { %861 = vst [vmem:[%s1953_s6] sm:%s1441_s12] %v860_v2 }
 0x18f PF: > { %s15_s24 = sadd.s32 1, %s1758_s24   ;;  %s2400_s18 = smov %s1738_s19 }
 0x190   : > { %p12_p1 = scmp.ge.s32.totalorder %s15_s24, 6   ;;  %s2401_s19 = smov %s1913_s8 }
 0x191   : > { %s2402_s20 = smov %s1750_s22  ;;  %s2403_s21 = smov %s1754_s23 }
 0x192   : > { %s2404_s22 = smov %s2407_s25  ;;  %s2405_s23 = smov %s2411_s26 }
 0x193   :  { %14 = sbr.rel (!%p12_p1) target bundleno = 6 (0x6), region = 201 }

</bundles_post_ra>
